<compile_context>
chip_gen: v7x
topology: tpu7x:2x2x1
jax: 0.10.0
libtpu: 0.0.40
codegen_flags: <defaults>
</compile_context>

<pallas_src>
import functools

import jax
import jax.numpy as jnp
from jax import lax
from jax.experimental import pallas as pl
from jax.experimental.pallas import tpu as pltpu

H1, H2, H3 = 256, 128, 64


def _round_up(x, m):
    return ((x + m - 1) // m) * m


def _cdiv(a, b):
    return -(-a // b)


def _pick_tile(batch, block_b):
    """Batch tile: 128-aligned (MXU cadence / bf16 sublane packing), as large
    as block_b allows, but always >= 2 grid steps when the batch permits so the
    'parallel' axis can shard across v7x's two TensorCores."""
    if batch <= 128:
        return batch                       # tiny batch: single full-array tile
    block_b = max(128, (block_b // 128) * 128)
    tb = min(block_b, _round_up(batch, 128))
    if _cdiv(batch, tb) < 2:
        tb = _round_up(_cdiv(batch, 2), 128)
    return tb


def mlp_kernel(x_ref, w1_ref, b1_ref, w2_ref, b2_ref,
               w3_ref, b3_ref, w4_ref, b4_ref, o_ref):
    # x_ref: [TB, D] f32 — cast to bf16 in-kernel (VPU, hidden under DMA/MXU).
    x = x_ref[...].astype(jnp.bfloat16)

    # layer1 + ReLU (bf16 MXU operands, f32 accumulation).
    h = jnp.dot(x, w1_ref[...], preferred_element_type=jnp.float32) + b1_ref[...]
    h = jnp.maximum(h, 0.0)
    # dropout(p=0.3): identity in eval mode

    # layer2 + ReLU
    h = jnp.dot(h.astype(jnp.bfloat16), w2_ref[...],
                preferred_element_type=jnp.float32) + b2_ref[...]
    h = jnp.maximum(h, 0.0)
    # dropout(p=0.3): identity in eval mode

    # layer3 + ReLU
    h = jnp.dot(h.astype(jnp.bfloat16), w3_ref[...],
                preferred_element_type=jnp.float32) + b3_ref[...]
    h = jnp.maximum(h, 0.0)

    # layer4 (out_features=1): contract the 64-wide feature axis of h against
    # the single w4 row -> lane-dense [1, TB] result (same transposed-rhs
    # dot_general pattern as flash attention's q.k^T), stored unmasked.
    out_row = lax.dot_general(
        w4_ref[...], h.astype(jnp.bfloat16),
        dimension_numbers=(((1,), (1,)), ((), ())),
        preferred_element_type=jnp.float32)            # [1, TB]
    o_ref[...] = (out_row + b4_ref[...]).astype(o_ref.dtype)


@functools.partial(jax.jit, static_argnames=("block_b",))
def linear_regression_model_forward(x, params, *, block_b=2048):
    """x: [B, input_dim] float32.

    params: kernel-ready dict from prepare_params(): bf16 weights stored
    [in, out], f32 biases [1, out], w4 as a [1, 64] bf16 row, b4 as [1, 1].
    """
    B, D = x.shape
    tb = _pick_tile(B, block_b)
    num_tiles = _cdiv(B, tb)

    # Explicit scoped-VMEM limit: above v5e's 16 MiB default for large tiles,
    # within v7x's 64 MiB physical VMEM.
    est = (2 * tb * D * 4                                   # x tile, double-buffered (f32)
           + 2 * 2 * (D * H1 + H1 * H2 + H2 * H3 + H3)      # resident bf16 weights
           + 6 * tb * (H1 + H2 + H3)                        # f32 activations + bf16 copies
           + 4 * 2 * tb)                                    # output row tiles
    vmem_limit = int(min(max(2 * est, 32 * 1024 * 1024), 64 * 1024 * 1024))

    resident = lambda shape: pl.BlockSpec(shape, lambda i: (0, 0))

    out = pl.pallas_call(
        mlp_kernel,
        out_shape=jax.ShapeDtypeStruct((num_tiles, 1, tb), jnp.float32),
        grid=(num_tiles,),
        in_specs=[
            pl.BlockSpec((tb, D), lambda i: (i, 0)),   # x: tiles over batch (f32)
            resident((D, H1)),  resident((1, H1)),     # w1, b1 (VMEM-resident)
            resident((H1, H2)), resident((1, H2)),     # w2, b2
            resident((H2, H3)), resident((1, H3)),     # w3, b3
            resident((1, H3)),  resident((1, 1)),      # w4 row, b4
        ],
        # Lane-dense output rows: one unmasked [1, tb] store per tile.
        out_specs=pl.BlockSpec((None, 1, tb), lambda i: (i, 0, 0)),
        compiler_params=pltpu.CompilerParams(
            dimension_semantics=("parallel",),
            vmem_limit_bytes=vmem_limit),
    )(x, params["w1"], params["b1"], params["w2"], params["b2"],
      params["w3"], params["b3"], params["w4_row"], params["b4"])

    return out.reshape(num_tiles * tb, 1)[:B]


def init_params(key, input_dim):
    """torch.nn.Linear-style init: U(-1/sqrt(fan_in), 1/sqrt(fan_in)).
    Weights stored transposed: [in, out] (PyTorch layout is [out, in])."""
    dims = [(input_dim, H1), (H1, H2), (H2, H3), (H3, 1)]
    params = {}
    keys = jax.random.split(key, 2 * len(dims))
    for i, (fan_in, fan_out) in enumerate(dims):
        bound = 1.0 / jnp.sqrt(jnp.float32(fan_in))
        params[f"w{i + 1}"] = jax.random.uniform(
            keys[2 * i], (fan_in, fan_out), minval=-bound, maxval=bound,
            dtype=jnp.float32)
        params[f"b{i + 1}"] = jax.random.uniform(
            keys[2 * i + 1], (1, fan_out), minval=-bound, maxval=bound,
            dtype=jnp.float32)
    return params


def prepare_params(params):
    """One-time (outside-jit) conversion to the kernel-ready layout:
    bf16 MXU weights, f32 biases, w4 flattened to a [1, 64] bf16 row."""
    return {
        "w1": params["w1"].astype(jnp.bfloat16),            # [D,   256]
        "w2": params["w2"].astype(jnp.bfloat16),            # [256, 128]
        "w3": params["w3"].astype(jnp.bfloat16),            # [128,  64]
        "w4_row": params["w4"].reshape(1, H3).astype(jnp.bfloat16),  # [1, 64]
        "b1": params["b1"], "b2": params["b2"], "b3": params["b3"],
        "b4": params["b4"].reshape(1, 1),
    }


def _ref_forward_bf16(x, params):
    """Plain-JAX reference with the same bf16-operand / f32-accumulate path."""
    bf = jnp.bfloat16
    h = jnp.dot(x.astype(bf), params["w1"].astype(bf),
                preferred_element_type=jnp.float32) + params["b1"]
    h = jnp.maximum(h, 0.0)
    h = jnp.dot(h.astype(bf), params["w2"].astype(bf),
                preferred_element_type=jnp.float32) + params["b2"]
    h = jnp.maximum(h, 0.0)
    h = jnp.dot(h.astype(bf), params["w3"].astype(bf),
                preferred_element_type=jnp.float32) + params["b3"]
    h = jnp.maximum(h, 0.0)
    return jnp.dot(h.astype(bf), params["w4"].astype(bf),
                   preferred_element_type=jnp.float32) + params["b4"]


def _ref_forward_f32(x, params):
    h = jnp.maximum(x @ params["w1"] + params["b1"], 0.0)
    h = jnp.maximum(h @ params["w2"] + params["b2"], 0.0)
    h = jnp.maximum(h @ params["w3"] + params["b3"], 0.0)
    return h @ params["w4"] + params["b4"]


if __name__ == "__main__":
    key = jax.random.PRNGKey(0)
    k_x, k_p = jax.random.split(key)

    # B=300 exercises a 2-tile grid (tb=256) with a ragged last tile
    # (no wrapper-side padding pass) and the lane-dense output path.
    B, input_dim = 300, 32
    x = jax.random.normal(k_x, (B, input_dim), dtype=jnp.float32)
    params = init_params(k_p, input_dim)
    prepped = prepare_params(params)          # one-time bf16 cast / reshape

    out = linear_regression_model_forward(x, prepped)
    out = jax.block_until_ready(out)
    assert out.shape == (B, 1)

    # bf16-aware reference (same precision path) — tight tolerance.
    ref_bf16 = _ref_forward_bf16(x, params)
    assert jnp.allclose(out, ref_bf16, atol=2e-3, rtol=2e-3), (
        float(jnp.max(jnp.abs(out - ref_bf16))))

    # f32 reference (module semantics) — loose tolerance for bf16 operands.
    ref_f32 = _ref_forward_f32(x, params)
    assert jnp.allclose(out, ref_f32, atol=5e-2, rtol=5e-2), (
        float(jnp.max(jnp.abs(out - ref_f32))))

    # TODO(synk): training-mode dropout (p=0.3) not implemented; eval-mode
    # identity matches the PyTorch reference in inference. In-kernel masks
    # would use pltpu.prng_seed / pltpu.prng_random_bits.
    print("KERNEL_OK")
</pallas_src>

<mosaic_0001>
module attributes {stable_mosaic.version = 11 : i64} {
  func.func @mlp_kernel(%arg0: i32, %arg1: memref<256x32xf32, #tpu.memory_space<vmem>>, %arg2: memref<32x256xbf16, #tpu.memory_space<vmem>>, %arg3: memref<1x256xf32, #tpu.memory_space<vmem>>, %arg4: memref<256x128xbf16, #tpu.memory_space<vmem>>, %arg5: memref<1x128xf32, #tpu.memory_space<vmem>>, %arg6: memref<128x64xbf16, #tpu.memory_space<vmem>>, %arg7: memref<1x64xf32, #tpu.memory_space<vmem>>, %arg8: memref<1x64xbf16, #tpu.memory_space<vmem>>, %arg9: memref<1x1xf32, #tpu.memory_space<vmem>>, %arg10: memref<1x1x256xf32, #tpu.memory_space<vmem>>) attributes {dimension_semantics = [#tpu.dimension_semantics<parallel>], iteration_bounds = array<i64: 2>, scalar_prefetch = 0 : i64, scratch_operands = 0 : i64, tpu.core_type = #tpu.core_type<tc>, window_params = [{transform_indices = @transform_0, window_bounds = array<i64: 256, 32>}, {pipeline_mode = #tpu.pipeline_mode<synchronous>, transform_indices = @transform_1, window_bounds = array<i64: 32, 256>}, {pipeline_mode = #tpu.pipeline_mode<synchronous>, transform_indices = @transform_2, window_bounds = array<i64: 1, 256>}, {pipeline_mode = #tpu.pipeline_mode<synchronous>, transform_indices = @transform_3, window_bounds = array<i64: 256, 128>}, {pipeline_mode = #tpu.pipeline_mode<synchronous>, transform_indices = @transform_4, window_bounds = array<i64: 1, 128>}, {pipeline_mode = #tpu.pipeline_mode<synchronous>, transform_indices = @transform_5, window_bounds = array<i64: 128, 64>}, {pipeline_mode = #tpu.pipeline_mode<synchronous>, transform_indices = @transform_6, window_bounds = array<i64: 1, 64>}, {pipeline_mode = #tpu.pipeline_mode<synchronous>, transform_indices = @transform_7, window_bounds = array<i64: 1, 64>}, {pipeline_mode = #tpu.pipeline_mode<synchronous>, transform_indices = @transform_8, window_bounds = array<i64: 1, 1>}, {transform_indices = @transform_9, window_bounds = array<i64: 1, 1, 256>}]} {
    %c0 = arith.constant 0 : index
    %c0_0 = arith.constant 0 : index
    %0 = vector.load %arg1[%c0, %c0_0] : memref<256x32xf32, #tpu.memory_space<vmem>>, vector<256x32xf32>
    %1 = arith.truncf %0 : vector<256x32xf32> to vector<256x32xbf16>
    %c0_1 = arith.constant 0 : index
    %c0_2 = arith.constant 0 : index
    %2 = vector.load %arg2[%c0_1, %c0_2] : memref<32x256xbf16, #tpu.memory_space<vmem>>, vector<32x256xbf16>
    %cst = arith.constant dense<0.000000e+00> : vector<256x256xf32>
    %3 = tpu.matmul %1, %2, %cst {dimension_numbers = #tpu.dot_dimension_numbers<[1], [0], [0], [1], [0, 0, 1, 1], [], []>} : vector<256x32xbf16>, vector<32x256xbf16>, vector<256x256xf32> -> vector<256x256xf32>
    %c0_3 = arith.constant 0 : index
    %c0_4 = arith.constant 0 : index
    %4 = vector.load %arg3[%c0_3, %c0_4] : memref<1x256xf32, #tpu.memory_space<vmem>>, vector<1x256xf32>
    %5 = vector.broadcast %4 : vector<1x256xf32> to vector<256x256xf32>
    %6 = arith.addf %3, %5 : vector<256x256xf32>
    %cst_5 = arith.constant 0.000000e+00 : f32
    %7 = vector.broadcast %cst_5 : f32 to vector<256x256xf32>
    %8 = arith.maximumf %6, %7 : vector<256x256xf32>
    %9 = arith.truncf %8 : vector<256x256xf32> to vector<256x256xbf16>
    %c0_6 = arith.constant 0 : index
    %c0_7 = arith.constant 0 : index
    %10 = vector.load %arg4[%c0_6, %c0_7] : memref<256x128xbf16, #tpu.memory_space<vmem>>, vector<256x128xbf16>
    %cst_8 = arith.constant dense<0.000000e+00> : vector<256x128xf32>
    %11 = tpu.matmul %9, %10, %cst_8 {dimension_numbers = #tpu.dot_dimension_numbers<[1], [0], [0], [1], [0, 0, 1, 1], [], []>} : vector<256x256xbf16>, vector<256x128xbf16>, vector<256x128xf32> -> vector<256x128xf32>
    %c0_9 = arith.constant 0 : index
    %c0_10 = arith.constant 0 : index
    %12 = vector.load %arg5[%c0_9, %c0_10] : memref<1x128xf32, #tpu.memory_space<vmem>>, vector<1x128xf32>
    %13 = vector.broadcast %12 : vector<1x128xf32> to vector<256x128xf32>
    %14 = arith.addf %11, %13 : vector<256x128xf32>
    %cst_11 = arith.constant 0.000000e+00 : f32
    %15 = vector.broadcast %cst_11 : f32 to vector<256x128xf32>
    %16 = arith.maximumf %14, %15 : vector<256x128xf32>
    %17 = arith.truncf %16 : vector<256x128xf32> to vector<256x128xbf16>
    %c0_12 = arith.constant 0 : index
    %c0_13 = arith.constant 0 : index
    %18 = vector.load %arg6[%c0_12, %c0_13] : memref<128x64xbf16, #tpu.memory_space<vmem>>, vector<128x64xbf16>
    %cst_14 = arith.constant dense<0.000000e+00> : vector<256x64xf32>
    %19 = tpu.matmul %17, %18, %cst_14 {dimension_numbers = #tpu.dot_dimension_numbers<[1], [0], [0], [1], [0, 0, 1, 1], [], []>} : vector<256x128xbf16>, vector<128x64xbf16>, vector<256x64xf32> -> vector<256x64xf32>
    %c0_15 = arith.constant 0 : index
    %c0_16 = arith.constant 0 : index
    %20 = vector.load %arg7[%c0_15, %c0_16] : memref<1x64xf32, #tpu.memory_space<vmem>>, vector<1x64xf32>
    %21 = vector.broadcast %20 : vector<1x64xf32> to vector<256x64xf32>
    %22 = arith.addf %19, %21 : vector<256x64xf32>
    %cst_17 = arith.constant 0.000000e+00 : f32
    %23 = vector.broadcast %cst_17 : f32 to vector<256x64xf32>
    %24 = arith.maximumf %22, %23 : vector<256x64xf32>
    %c0_18 = arith.constant 0 : index
    %c0_19 = arith.constant 0 : index
    %25 = vector.load %arg8[%c0_18, %c0_19] : memref<1x64xbf16, #tpu.memory_space<vmem>>, vector<1x64xbf16>
    %26 = arith.truncf %24 : vector<256x64xf32> to vector<256x64xbf16>
    %cst_20 = arith.constant dense<0.000000e+00> : vector<1x256xf32>
    %27 = tpu.matmul %25, %26, %cst_20 {dimension_numbers = #tpu.dot_dimension_numbers<[1], [1], [0], [0], [0, 0, 1, 0], [], []>} : vector<1x64xbf16>, vector<256x64xbf16>, vector<1x256xf32> -> vector<1x256xf32>
    %c0_21 = arith.constant 0 : index
    %c0_22 = arith.constant 0 : index
    %28 = vector.load %arg9[%c0_21, %c0_22] : memref<1x1xf32, #tpu.memory_space<vmem>>, vector<1x1xf32>
    %29 = vector.broadcast %28 : vector<1x1xf32> to vector<1x256xf32>
    %30 = arith.addf %27, %29 : vector<1x256xf32>
    %c0_23 = arith.constant 0 : index
    %c0_24 = arith.constant 0 : index
    %c0_25 = arith.constant 0 : index
    %31 = vector.load %arg10[%c0_23, %c0_24, %c0_25] : memref<1x1x256xf32, #tpu.memory_space<vmem>>, vector<1x1x256xf32>
    %32 = vector.shape_cast %31 : vector<1x1x256xf32> to vector<1x256xf32>
    %33 = vector.shape_cast %30 : vector<1x256xf32> to vector<1x1x256xf32>
    tpu.vector_store %arg10[%c0_23, %c0_24, %c0_25], %33 {strides = array<i32>} : memref<1x1x256xf32, #tpu.memory_space<vmem>>, vector<1x1x256xf32>,
    return
  }
  func.func @transform_0(%arg0: i32) -> (i32, i32) {
    %c0_i32 = arith.constant 0 : i32
    %c0_i32_0 = arith.constant 0 : i32
    return %arg0, %c0_i32 : i32, i32
  }
  func.func @transform_1(%arg0: i32) -> (i32, i32) {
    %c0_i32 = arith.constant 0 : i32
    %c0_i32_0 = arith.constant 0 : i32
    %c0_i32_1 = arith.constant 0 : i32
    return %c0_i32, %c0_i32_0 : i32, i32
  }
  func.func @transform_2(%arg0: i32) -> (i32, i32) {
    %c0_i32 = arith.constant 0 : i32
    %c0_i32_0 = arith.constant 0 : i32
    %c0_i32_1 = arith.constant 0 : i32
    return %c0_i32, %c0_i32_0 : i32, i32
  }
  func.func @transform_3(%arg0: i32) -> (i32, i32) {
    %c0_i32 = arith.constant 0 : i32
    %c0_i32_0 = arith.constant 0 : i32
    %c0_i32_1 = arith.constant 0 : i32
    return %c0_i32, %c0_i32_0 : i32, i32
  }
  func.func @transform_4(%arg0: i32) -> (i32, i32) {
    %c0_i32 = arith.constant 0 : i32
    %c0_i32_0 = arith.constant 0 : i32
    %c0_i32_1 = arith.constant 0 : i32
    return %c0_i32, %c0_i32_0 : i32, i32
  }
  func.func @transform_5(%arg0: i32) -> (i32, i32) {
    %c0_i32 = arith.constant 0 : i32
    %c0_i32_0 = arith.constant 0 : i32
    %c0_i32_1 = arith.constant 0 : i32
    return %c0_i32, %c0_i32_0 : i32, i32
  }
  func.func @transform_6(%arg0: i32) -> (i32, i32) {
    %c0_i32 = arith.constant 0 : i32
    %c0_i32_0 = arith.constant 0 : i32
    %c0_i32_1 = arith.constant 0 : i32
    return %c0_i32, %c0_i32_0 : i32, i32
  }
  func.func @transform_7(%arg0: i32) -> (i32, i32) {
    %c0_i32 = arith.constant 0 : i32
    %c0_i32_0 = arith.constant 0 : i32
    %c0_i32_1 = arith.constant 0 : i32
    return %c0_i32, %c0_i32_0 : i32, i32
  }
  func.func @transform_8(%arg0: i32) -> (i32, i32) {
    %c0_i32 = arith.constant 0 : i32
    %c0_i32_0 = arith.constant 0 : i32
    %c0_i32_1 = arith.constant 0 : i32
    return %c0_i32, %c0_i32_0 : i32, i32
  }
  func.func @transform_9(%arg0: i32) -> (i32, i32, i32) {
    %c0_i32 = arith.constant 0 : i32
    %c0_i32_0 = arith.constant 0 : i32
    %c0_i32_1 = arith.constant 0 : i32
    return %arg0, %c0_i32, %c0_i32_0 : i32, i32, i32
  }
}

</mosaic_0001>

<bundles_post_ra>
// kernel: linear_regression_model_forward.1
= control target key start
LH: loop header
LB: loop body
LE: loop exit
PB: predicated region body
PF: predicated region fallthrough
CT: control target
= control target key end

     0   :  { %s1953_s11 = smov 0   ;;  %s2328_s0 = inlined_call_operand.vmem [shape: f32[300,32], index: 0, kind: input, shape index: {}]   ;;  %s2329_s1 = inlined_call_operand.vmem [shape: bf16[32,256], index: 1, kind: input, shape index: {}]   ;;  %s2330_s2 = inlined_call_operand.vmem [shape: f32[1,256], index: 2, kind: input, shape index: {}]   ;;  %s2331_s3 = inlined_call_operand.vmem [shape: bf16[256,128], index: 3, kind: input, shape index: {}]   ;;  %s2332_s4 = inlined_call_operand.vmem [shape: f32[1,128], index: 4, kind: input, shape index: {}]   ;;  %s2333_s5 = inlined_call_operand.vmem [shape: bf16[128,64], index: 5, kind: input, shape index: {}]   ;;  %s2334_s6 = inlined_call_operand.vmem [shape: f32[1,64], index: 6, kind: input, shape index: {}]   ;;  %s2335_s7 = inlined_call_operand.vmem [shape: bf16[1,64], index: 7, kind: input, shape index: {}]   ;;  %s2336_s8 = inlined_call_operand.<no memory space> [shape: f32[1,1], index: 8, kind: input, shape index: {}]   ;;  %s2337_s9 = inlined_call_operand.vmem [shape: f32[2,1,256], index: 9, kind: output, shape index: {}]  }
   0x1   :  { %v14_v0 = vstv %s2336_s8 }
   0x2   :  { %15 = vst [vmem:[#allocation2] sm:$0x1] %v14_v0 }
   0x3 LB: > { %s1959_s12 = sadd.s32 4294967295, %s1896_s11   ;;  %p1586_p0 = scmp.ge.s32.totalorder %s1896_s11, 1  ;;  %s1896_s11 = sphi %s1953_s11, %s21_s11  }
   0x4   : > { %p298_p1 = scmp.lt.s32.totalorder %s1896_s11, 3 }
   0x6   : > { %p299_p2 = pnand %p1586_p0, %p298_p1 }
   0x7   : > { %v1860_v1 = vld [vmem:[%s2329_s1 + $0x4] ss:$8 sps:$4 sm:$0xff] (!%p299_p2)   ;;  %s1587_s8 = sshll.u32 (!%p299_p2), %s1959_s12, 5  ;;  %v1862_v2 = vld [vmem:[%s2329_s1] ss:$8 sps:$4 sm:$0xff] (!%p299_p2)   ;;  %v1898_v3 = vmov (!%p299_p2), 0  }
   0x8   : > { %302 = sbr.rel (%p299_p2) target bundleno = 1045 (0x415), region = 56  ;;  %521 = vmatprep.mubr.bf16.mxu0 (!%p299_p2), %v1898_v3  ;;  %p342_p3 = scmp.lt.s32.totalorder (!%p299_p2), %s1587_s8, 37  ;;  %1859 = vset.pattern.permute.xlu0 (!%p299_p2), %v1898_v3  ;;  %v1863_v4 = vld [vmem:[%s2329_s1 + $0x14] ss:$8 sps:$4 sm:$0xff] (!%p299_p2)   ;;  %v1865_v5 = vld [vmem:[%s2329_s1 + $0x10] ss:$8 sps:$4 sm:$0xff] (!%p299_p2)  }
   0x9   : > { %489 = vmatprep.subr.bf16.mxu0 (!%p299_p2), %v1860_v1  ;;  %v1866_v6 = vld [vmem:[%s2331_s3 + $0x40] sm:$0xff] (!%p299_p2)   ;;  %v1868_v8 = vld [vmem:[%s2331_s3 + $0x48] sm:$0xff] (!%p299_p2)   ;;  %vm440_vm0 = vcmask (!%p299_p2), 261120   ;;  %v1870_v18 = vld [vmem:[%s2331_s3 + $0x50] sm:$0xff] (!%p299_p2)   ;;  %vm1413_vm1 = vcmask (!%p299_p2), 523264   ;;  %p351_p4 = scmp.lt.s32.totalorder (!%p299_p2), %s1959_s12, 1 }
   0xa   : > { %490 = vmatpush1.bf16.msra.mxu0 (!%p299_p2), %v1862_v2  ;;  %v1867_v7 = vld [vmem:[%s2331_s3] sm:$0xff] (!%p299_p2)   ;;  %1639 = vmatprep.subr.bf16.mxu1 (!%p299_p2), %v1866_v6  ;;  %v1869_v9 = vld [vmem:[%s2331_s3 + $0x8] sm:$0xff] (!%p299_p2)   ;;  %v1871_v19 = vld [vmem:[%s2331_s3 + $0x10] sm:$0xff] (!%p299_p2)  }
   0xb   : > { %491 = vmatprep.subr.bf16.mxu0 (!%p299_p2), %v1863_v4  ;;  %1640 = vmatpush3.bf16.msra.mxu1 (!%p299_p2), %v1867_v7  ;;  %v1872_v20 = vld [vmem:[%s2331_s3 + $0x58] sm:$0xff] (!%p299_p2)   ;;  %v1874_v23 = vld [vmem:[%s2331_s3 + $0x60] sm:$0xff] (!%p299_p2)   ;;  %v1876_v25 = vld [vmem:[%s2331_s3 + $0x68] sm:$0xff] (!%p299_p2)   ;;  %v410_v7 = vlaneseq (!%p299_p2) }
   0xc   : > { %1641 = vmatprep.subr.bf16.mxu1 (!%p299_p2), %v1868_v8  ;;  %v1873_v21 = vld [vmem:[%s2331_s3 + $0x18] sm:$0xff] (!%p299_p2)   ;;  %v1875_v24 = vld [vmem:[%s2331_s3 + $0x20] sm:$0xff] (!%p299_p2)   ;;  %v1877_v52 = vld [vmem:[%s2331_s3 + $0x28] sm:$0xff] (!%p299_p2)  }
   0xd   : > { %v1878_v54 = vld [vmem:[%s2331_s3 + $0x70] sm:$0xff] (!%p299_p2)   ;;  %v1880_v56 = vld [vmem:[%s2331_s3 + $0x78] sm:$0xff] (!%p299_p2)   ;;  %v2095_v8 = vshrl.u32 (!%p299_p2), %v410_v7, 7  ;;  %vm1526_vm2 = vcmp.lt.s32.totalorder (!%p299_p2), %v410_v7, 256 }
   0xe   : > { %492 = vmatpush1.bf16.msra.mxu0 (!%p299_p2), %v1865_v5  ;;  %v1879_v55 = vld [vmem:[%s2331_s3 + $0x30] sm:$0xff] (!%p299_p2)   ;;  %v1881_v59 = vld [vmem:[%s2331_s3 + $0x38] sm:$0xff] (!%p299_p2)  }
   0xf   : > { %s2339_s8 = smov (!%p342_p3, %s1587_s8), 37  ;;  %1642 = vmatpush3.bf16.msra.mxu1 %v1869_v9  ;;  %v412_v9 = vsub.s32 0, %v2095_v8  ;;  %s2341_s12 = smov (!%p351_p4, %s1959_s12), 1 }
  0x10   : > { %s1588_s25 = sshll.u32 %s2339_s8, 3  ;;  %1643 = vmatprep.subr.bf16.mxu1 %v1870_v18  ;;  %s1589_s21 = sshll.u32 %s2341_s12, 1 }
  0x11   : > { %s1990_s30 = scalar_lea.vmem %s2328_s0, %s1588_s25  ;;  %s354_s24 = scalar_lea.vmem %s2337_s9, %s1589_s21 }
  0x12   : > { %v356_v10 = vld [vmem:[%s1990_s30] sm:$0xff]  ;;  %v357_v11 = vld [vmem:[%s1990_s30 + $0x8] sm:$0xff]  ;;  %v358_v13 = vld [vmem:[%s1990_s30 + $0x10] sm:$0xff] }
  0x13   : > { %v388_v12 = vpack.c.bf16 %v357_v11, %v356_v10  ;;  %v359_v14 = vld [vmem:[%s1990_s30 + $0x18] sm:$0xff]  ;;  %v360_v16 = vld [vmem:[%s1990_s30 + $0x20] sm:$0xff]  ;;  %v361_v17 = vld [vmem:[%s1990_s30 + $0x28] sm:$0xff]  ;;  %1644 = vmatpush3.bf16.msra.mxu1 %v1871_v19  ;;  %v416_v11 = vsub.s32 1, %v2095_v8 }
  0x14   : > { %v389_v15 = vpack.c.bf16 %v359_v14, %v358_v13  ;;  %v390_v22 = vpack.c.bf16 %v361_v17, %v360_v16  ;;  %1645 = vmatprep.subr.bf16.mxu1 %v1872_v20  ;;  %v362_v26 = vld [vmem:[%s1990_s30 + $0x30] sm:$0xff]  ;;  %v363_v27 = vld [vmem:[%s1990_s30 + $0x38] sm:$0xff]  ;;  %v364_v29 = vld [vmem:[%s1990_s30 + $0x40] sm:$0xff] }
  0x15   : > { %1594 = vmatmul.mubr.msk.bf16.vlgmr.msra.gmra.mrb[0].mxu0 %vm440_vm0, %v388_v12  ;;  %v391_v28 = vpack.c.bf16 %v363_v27, %v362_v26  ;;  %v365_v30 = vld [vmem:[%s1990_s30 + $0x48] sm:$0xff]  ;;  %v366_v32 = vld [vmem:[%s1990_s30 + $0x50] sm:$0xff]  ;;  %v367_v33 = vld [vmem:[%s1990_s30 + $0x58] sm:$0xff] }
  0x16   : > { %531 = vmatprep.mubr.bf16.mxu0 %v1898_v3  ;;  %v392_v31 = vpack.c.bf16 %v365_v30, %v364_v29  ;;  %v393_v34 = vpack.c.bf16 %v367_v33, %v366_v32  ;;  %v368_v35 = vld [vmem:[%s1990_s30 + $0x60] sm:$0xff]  ;;  %v369_v36 = vld [vmem:[%s1990_s30 + $0x68] sm:$0xff]  ;;  %v370_v38 = vld [vmem:[%s1990_s30 + $0x70] sm:$0xff] }
  0x17   : > { %1646 = vmatpush3.bf16.msra.mxu1 %v1873_v21  ;;  %v394_v37 = vpack.c.bf16 %v369_v36, %v368_v35  ;;  %v371_v39 = vld [vmem:[%s1990_s30 + $0x78] sm:$0xff]  ;;  %v372_v41 = vld [vmem:[%s1990_s30 + $0x80] sm:$0xff]  ;;  %v373_v42 = vld [vmem:[%s1990_s30 + $0x88] sm:$0xff] }
  0x18   : > { %1647 = vmatprep.subr.bf16.mxu1 %v1874_v23  ;;  %v395_v40 = vpack.c.bf16 %v371_v39, %v370_v38  ;;  %v396_v43 = vpack.c.bf16 %v373_v42, %v372_v41  ;;  %v374_v44 = vld [vmem:[%s1990_s30 + $0x90] sm:$0xff]  ;;  %v375_v45 = vld [vmem:[%s1990_s30 + $0x98] sm:$0xff]  ;;  %v376_v47 = vld [vmem:[%s1990_s30 + $0xa0] sm:$0xff] }
  0x19   : > { %v397_v46 = vpack.c.bf16 %v375_v45, %v374_v44  ;;  %v377_v48 = vld [vmem:[%s1990_s30 + $0xa8] sm:$0xff]  ;;  %v378_v50 = vld [vmem:[%s1990_s30 + $0xb0] sm:$0xff]  ;;  %v379_v51 = vld [vmem:[%s1990_s30 + $0xb8] sm:$0xff] }
  0x1a   : > { %v398_v49 = vpack.c.bf16 %v377_v48, %v376_v47  ;;  %v399_v53 = vpack.c.bf16 %v379_v51, %v378_v50  ;;  %v380_v57 = vld [vmem:[%s1990_s30 + $0xc0] sm:$0xff]  ;;  %v381_v58 = vld [vmem:[%s1990_s30 + $0xc8] sm:$0xff]  ;;  %v382_v61 = vld [vmem:[%s1990_s30 + $0xd0] sm:$0xff] }
  0x1b   : > { %1648 = vmatpush3.bf16.msra.mxu1 %v1875_v24  ;;  %v400_v60 = vpack.c.bf16 %v381_v58, %v380_v57  ;;  %v383_v62 = vld [vmem:[%s1990_s30 + $0xd8] sm:$0xff]  ;;  %v384_v0 = vld [vmem:[%s1990_s30 + $0xe0] sm:$0xff]  ;;  %v385_v1 = vld [vmem:[%s1990_s30 + $0xe8] sm:$0xff] }
  0x1c   : > { %1649 = vmatprep.subr.bf16.mxu1 %v1876_v25  ;;  %v401_v63 = vpack.c.bf16 %v383_v62, %v382_v61  ;;  %v402_v2 = vpack.c.bf16 %v385_v1, %v384_v0  ;;  %v386_v4 = vld [vmem:[%s1990_s30 + $0xf0] sm:$0xff]  ;;  %v387_v5 = vld [vmem:[%s1990_s30 + $0xf8] sm:$0xff]  ;;  %v408_v10 = vld [vmem:[%s2330_s2] sm:$0x3] }
  0x1d   : > { %1595 = vmatmul.mubr.msk.bf16.gmra.mrb[4].mxu0 %vm440_vm0, %v389_v15  ;;  %v403_v6 = vpack.c.bf16 %v387_v5, %v386_v4  ;;  %v2106_v12 = vrot.slane %v408_v10, %v416_v11  ;;  %v1882_v20 = vld [vmem:[%s2333_s5] sm:$0xff]   ;;  %v1883_v21 = vld [vmem:[%s2333_s5 + $0x8] sm:$0xff]  }
  0x1e   : > { %541 = vmatprep.mubr.bf16.mxu0 %v1898_v3  ;;  %1793 = vmatprep.subr.bf16.mxu0 %v1882_v20 }
  0x1f   : > { %1650 = vmatpush3.bf16.msra.mxu1 %v1877_v52  ;;  %1794 = vmatpush3.bf16.msra.mxu0 %v1882_v20 }
  0x20   : > { %1651 = vmatprep.subr.bf16.mxu1 %v1878_v54  ;;  %1795 = vmatprep.subr.bf16.mxu0 %v1883_v21 }
  0x23   : > { %1652 = vmatpush3.bf16.msra.mxu1 %v1879_v55  ;;  %1796 = vmatpush3.bf16.msra.mxu0 %v1883_v21 }
  0x24   : > { %1653 = vmatprep.subr.bf16.mxu1 %v1880_v56 }
  0x25   : > { %1596 = vmatmul.mubr.msk.bf16.gmra.mrb[8].mxu0 %vm440_vm0, %v390_v22 }
  0x26   : > { %551 = vmatprep.mubr.bf16.mxu0 %v1898_v3 }
  0x27   : > { %1654 = vmatpush3.bf16.msra.mxu1 %v1881_v59 }
  0x2d   : > { %1597 = vmatmul.mubr.msk.bf16.gmra.mrb[12].mxu0 %vm440_vm0, %v391_v28  ;;  %v1884_v28 = vld [vmem:[%s2333_s5 + $0x10] sm:$0xff]  }
  0x2e   : > { %561 = vmatprep.mubr.bf16.mxu0 %v1898_v3  ;;  %1797 = vmatprep.subr.bf16.mxu0 %v1884_v28 }
  0x2f   : > { %1798 = vmatpush3.bf16.msra.mxu0 %v1884_v28 }
  0x35   : > { %1598 = vmatmul.mubr.msk.bf16.gmra.mrb[16].mxu0 %vm440_vm0, %v392_v31 }
  0x36   : > { %571 = vmatprep.mubr.bf16.mxu0 %v1898_v3 }
  0x3d   : > { %1599 = vmatmul.mubr.msk.bf16.gmra.mrb[20].mxu0 %vm440_vm0, %v393_v34 }
  0x3e   : > { %581 = vmatprep.mubr.bf16.mxu0 %v1898_v3 }
  0x45   : > { %1600 = vmatmul.mubr.msk.bf16.gmra.mrb[24].mxu0 %vm440_vm0, %v394_v37 }
  0x46   : > { %591 = vmatprep.mubr.bf16.mxu0 %v1898_v3 }
  0x4d   : > { %1601 = vmatmul.mubr.msk.bf16.gmra.mrb[28].mxu0 %vm440_vm0, %v395_v40 }
  0x4e   : > { %601 = vmatprep.mubr.bf16.mxu0 %v1898_v3 }
  0x55   : > { %1602 = vmatmul.mubr.msk.bf16.gmra.mrb[32].mxu0 %vm440_vm0, %v396_v43 }
  0x56   : > { %611 = vmatprep.mubr.bf16.mxu0 %v1898_v3 }
  0x5d   : > { %1603 = vmatmul.mubr.msk.bf16.gmra.mrb[36].mxu0 %vm440_vm0, %v397_v46 }
  0x5e   : > { %621 = vmatprep.mubr.bf16.mxu0 %v1898_v3 }
  0x65   : > { %1604 = vmatmul.mubr.msk.bf16.gmra.mrb[40].mxu0 %vm440_vm0, %v398_v49 }
  0x66   : > { %631 = vmatprep.mubr.bf16.mxu0 %v1898_v3 }
  0x6d   : > { %1605 = vmatmul.mubr.msk.bf16.gmra.mrb[44].mxu0 %vm440_vm0, %v399_v53 }
  0x6e   : > { %641 = vmatprep.mubr.bf16.mxu0 %v1898_v3 }
  0x75   : > { %1606 = vmatmul.mubr.msk.bf16.gmra.mrb[48].mxu0 %vm440_vm0, %v400_v60 }
  0x76   : > { %651 = vmatprep.mubr.bf16.mxu0 %v1898_v3 }
  0x7d   : > { %1607 = vmatmul.mubr.msk.bf16.gmra.mrb[52].mxu0 %vm440_vm0, %v401_v63 }
  0x7e   : > { %661 = vmatprep.mubr.bf16.mxu0 %v1898_v3 }
  0x85   : > { %1608 = vmatmul.mubr.msk.bf16.gmra.mrb[56].mxu0 %vm440_vm0, %v402_v2 }
  0x86   : > { %671 = vmatprep.mubr.bf16.mxu0 %v1898_v3  ;;  %v2104_v3 = vrot.slane %v408_v10, %v412_v9 }
  0x8d   : > { %1609 = vmatmul.mubr.msk.bf16.gmra.mrb[60].mxu0 %vm440_vm0, %v403_v6 }
  0xe8   : > { %v523_v13 = vpop.f32.mrb[0].mxu0 }
  0xe9   : > { %v524_v14 = vadd.f32 %v523_v13, %v2104_v3  ;;  %v525_v15 = vpop.f32.mrb[1].mxu0 }
  0xea   : > { %v526_v16 = vadd.f32 %v525_v15, %v2106_v12  ;;  %v527_v17 = vpop.f32.mrb[2].mxu0 }
  0xeb   : > { %v528_v18 = vadd.f32 %v527_v17, %v2104_v3  ;;  %v529_v19 = vpop.f32.mrb[3].mxu0  ;;  %v682_v23 = vmax.f32 %v524_v14, 0.0 }
  0xec   : > { %v530_v22 = vadd.f32 %v529_v19, %v2106_v12  ;;  %v683_v25 = vmax.f32 %v526_v16, 0.0 }
  0xed   : > { %v684_v24 = vmax.f32 %v528_v18, 0.0 }
  0xee   : > { %v685_v26 = vmax.f32 %v530_v22, 0.0 }
  0xef   : > { %v746_v27 = vpack.c.bf16 %v684_v24, %v682_v23 }
  0xf0   : > { %v533_v29 = vpop.f32.mrb[4].mxu0  ;;  %v747_v30 = vpack.c.bf16 %v685_v26, %v683_v25 }
  0xf1   : > { %v534_v31 = vadd.f32 %v533_v29, %v2104_v3  ;;  %v535_v32 = vpop.f32.mrb[5].mxu0 }
  0xf2   : > { %v536_v33 = vadd.f32 %v535_v32, %v2106_v12  ;;  %v537_v34 = vpop.f32.mrb[6].mxu0  ;;  %945 = vmatprep.mubr.bf16.mxu1 %v747_v30 }
  0xf3   : > { %v538_v35 = vadd.f32 %v537_v34, %v2104_v3  ;;  %v539_v36 = vpop.f32.mrb[7].mxu0  ;;  %946 = vmatmul.mubr.bf16.vlgmr.msra.gmra.mrb[0].mxu1 %v746_v27  ;;  %v686_v38 = vmax.f32 %v534_v31, 0.0 }
  0xf4   : > { %v540_v37 = vadd.f32 %v539_v36, %v2106_v12  ;;  %v687_v40 = vmax.f32 %v536_v33, 0.0 }
  0xf5   : > { %v688_v39 = vmax.f32 %v538_v35, 0.0 }
  0xf6   : > { %v689_v41 = vmax.f32 %v540_v37, 0.0 }
  0xf7   : > { %v748_v42 = vpack.c.bf16 %v688_v39, %v686_v38 }
  0xf8   : > { %v749_v43 = vpack.c.bf16 %v689_v41, %v687_v40  ;;  %v543_v44 = vpop.f32.mrb[8].mxu0 }
  0xf9   : > { %v544_v45 = vadd.f32 %v543_v44, %v2104_v3  ;;  %v545_v46 = vpop.f32.mrb[9].mxu0 }
  0xfa   : > { %v546_v47 = vadd.f32 %v545_v46, %v2106_v12  ;;  %v547_v48 = vpop.f32.mrb[10].mxu0  ;;  %953 = vmatprep.mubr.bf16.mxu1 %v749_v43 }
  0xfb   : > { %v548_v49 = vadd.f32 %v547_v48, %v2104_v3  ;;  %v549_v50 = vpop.f32.mrb[11].mxu0  ;;  %954 = vmatmul.mubr.bf16.gmra.mrb[4].mxu1 %v748_v42  ;;  %v690_v52 = vmax.f32 %v544_v45, 0.0 }
  0xfc   : > { %v550_v51 = vadd.f32 %v549_v50, %v2106_v12  ;;  %v691_v54 = vmax.f32 %v546_v47, 0.0 }
  0xfd   : > { %v692_v53 = vmax.f32 %v548_v49, 0.0 }
  0xfe   : > { %v693_v55 = vmax.f32 %v550_v51, 0.0 }
  0xff   : > { %v750_v56 = vpack.c.bf16 %v692_v53, %v690_v52 }
 0x100   : > { %v751_v57 = vpack.c.bf16 %v693_v55, %v691_v54  ;;  %v553_v58 = vpop.f32.mrb[12].mxu0 }
 0x101   : > { %v554_v59 = vadd.f32 %v553_v58, %v2104_v3  ;;  %v555_v60 = vpop.f32.mrb[13].mxu0 }
 0x102   : > { %v556_v61 = vadd.f32 %v555_v60, %v2106_v12  ;;  %v557_v62 = vpop.f32.mrb[14].mxu0  ;;  %961 = vmatprep.mubr.bf16.mxu1 %v751_v57 }
 0x103   : > { %v558_v63 = vadd.f32 %v557_v62, %v2104_v3  ;;  %v559_v0 = vpop.f32.mrb[15].mxu0  ;;  %962 = vmatmul.mubr.bf16.gmra.mrb[8].mxu1 %v750_v56  ;;  %v694_v2 = vmax.f32 %v554_v59, 0.0 }
 0x104   : > { %v560_v1 = vadd.f32 %v559_v0, %v2106_v12  ;;  %v695_v5 = vmax.f32 %v556_v61, 0.0 }
 0x105   : > { %v696_v4 = vmax.f32 %v558_v63, 0.0 }
 0x106   : > { %v697_v6 = vmax.f32 %v560_v1, 0.0 }
 0x107   : > { %v752_v10 = vpack.c.bf16 %v696_v4, %v694_v2 }
 0x108   : > { %v753_v11 = vpack.c.bf16 %v697_v6, %v695_v5  ;;  %v563_v13 = vpop.f32.mrb[16].mxu0 }
 0x109   : > { %v564_v14 = vadd.f32 %v563_v13, %v2104_v3  ;;  %v565_v15 = vpop.f32.mrb[17].mxu0 }
 0x10a   : > { %v566_v16 = vadd.f32 %v565_v15, %v2106_v12  ;;  %v567_v17 = vpop.f32.mrb[18].mxu0  ;;  %969 = vmatprep.mubr.bf16.mxu1 %v753_v11 }
 0x10b   : > { %v568_v18 = vadd.f32 %v567_v17, %v2104_v3  ;;  %v569_v19 = vpop.f32.mrb[19].mxu0  ;;  %970 = vmatmul.mubr.bf16.gmra.mrb[12].mxu1 %v752_v10  ;;  %v698_v21 = vmax.f32 %v564_v14, 0.0 }
 0x10c   : > { %v570_v20 = vadd.f32 %v569_v19, %v2106_v12  ;;  %v699_v23 = vmax.f32 %v566_v16, 0.0 }
 0x10d   : > { %v700_v22 = vmax.f32 %v568_v18, 0.0 }
 0x10e   : > { %v701_v24 = vmax.f32 %v570_v20, 0.0 }
 0x10f   : > { %v754_v25 = vpack.c.bf16 %v700_v22, %v698_v21 }
 0x110   : > { %v755_v26 = vpack.c.bf16 %v701_v24, %v699_v23  ;;  %v573_v27 = vpop.f32.mrb[20].mxu0 }
 0x111   : > { %v574_v28 = vadd.f32 %v573_v27, %v2104_v3  ;;  %v575_v29 = vpop.f32.mrb[21].mxu0 }
 0x112   : > { %v576_v30 = vadd.f32 %v575_v29, %v2106_v12  ;;  %v577_v31 = vpop.f32.mrb[22].mxu0  ;;  %977 = vmatprep.mubr.bf16.mxu1 %v755_v26 }
 0x113   : > { %v578_v32 = vadd.f32 %v577_v31, %v2104_v3  ;;  %v579_v33 = vpop.f32.mrb[23].mxu0  ;;  %978 = vmatmul.mubr.bf16.gmra.mrb[16].mxu1 %v754_v25  ;;  %v702_v35 = vmax.f32 %v574_v28, 0.0 }
 0x114   : > { %v580_v34 = vadd.f32 %v579_v33, %v2106_v12  ;;  %v703_v37 = vmax.f32 %v576_v30, 0.0 }
 0x115   : > { %v704_v36 = vmax.f32 %v578_v32, 0.0 }
 0x116   : > { %v705_v38 = vmax.f32 %v580_v34, 0.0 }
 0x117   : > { %v756_v39 = vpack.c.bf16 %v704_v36, %v702_v35 }
 0x118   : > { %v757_v40 = vpack.c.bf16 %v705_v38, %v703_v37  ;;  %v583_v41 = vpop.f32.mrb[24].mxu0 }
 0x119   : > { %v584_v42 = vadd.f32 %v583_v41, %v2104_v3  ;;  %v585_v43 = vpop.f32.mrb[25].mxu0 }
 0x11a   : > { %v586_v44 = vadd.f32 %v585_v43, %v2106_v12  ;;  %v587_v45 = vpop.f32.mrb[26].mxu0  ;;  %985 = vmatprep.mubr.bf16.mxu1 %v757_v40 }
 0x11b   : > { %v588_v46 = vadd.f32 %v587_v45, %v2104_v3  ;;  %v589_v47 = vpop.f32.mrb[27].mxu0  ;;  %986 = vmatmul.mubr.bf16.gmra.mrb[20].mxu1 %v756_v39  ;;  %v706_v49 = vmax.f32 %v584_v42, 0.0 }
 0x11c   : > { %v590_v48 = vadd.f32 %v589_v47, %v2106_v12  ;;  %v707_v51 = vmax.f32 %v586_v44, 0.0 }
 0x11d   : > { %v708_v50 = vmax.f32 %v588_v46, 0.0 }
 0x11e   : > { %v709_v52 = vmax.f32 %v590_v48, 0.0 }
 0x11f   : > { %v758_v53 = vpack.c.bf16 %v708_v50, %v706_v49 }
 0x120   : > { %v759_v54 = vpack.c.bf16 %v709_v52, %v707_v51  ;;  %v593_v55 = vpop.f32.mrb[28].mxu0 }
 0x121   : > { %v594_v56 = vadd.f32 %v593_v55, %v2104_v3  ;;  %v595_v57 = vpop.f32.mrb[29].mxu0 }
 0x122   : > { %v596_v58 = vadd.f32 %v595_v57, %v2106_v12  ;;  %v597_v59 = vpop.f32.mrb[30].mxu0  ;;  %993 = vmatprep.mubr.bf16.mxu1 %v759_v54 }
 0x123   : > { %v598_v60 = vadd.f32 %v597_v59, %v2104_v3  ;;  %v599_v61 = vpop.f32.mrb[31].mxu0  ;;  %994 = vmatmul.mubr.bf16.gmra.mrb[24].mxu1 %v758_v53  ;;  %v710_v63 = vmax.f32 %v594_v56, 0.0 }
 0x124   : > { %v600_v62 = vadd.f32 %v599_v61, %v2106_v12  ;;  %v711_v1 = vmax.f32 %v596_v58, 0.0 }
 0x125   : > { %v712_v0 = vmax.f32 %v598_v60, 0.0  ;;  %v1885_v60 = vld [vmem:[%s2333_s5 + $0x18] sm:$0xff]  }
 0x126   : > { %v713_v2 = vmax.f32 %v600_v62, 0.0  ;;  %1799 = vmatprep.subr.bf16.mxu0 %v1885_v60 }
 0x127   : > { %v760_v4 = vpack.c.bf16 %v712_v0, %v710_v63  ;;  %1800 = vmatpush3.bf16.msra.mxu0 %v1885_v60 }
 0x128   : > { %v761_v5 = vpack.c.bf16 %v713_v2, %v711_v1  ;;  %v603_v6 = vpop.f32.mrb[32].mxu0 }
 0x129   : > { %v604_v10 = vadd.f32 %v603_v6, %v2104_v3  ;;  %v605_v11 = vpop.f32.mrb[33].mxu0 }
 0x12a   : > { %v606_v13 = vadd.f32 %v605_v11, %v2106_v12  ;;  %v607_v14 = vpop.f32.mrb[34].mxu0  ;;  %1001 = vmatprep.mubr.bf16.mxu1 %v761_v5  ;;  %v1886_v5 = vld [vmem:[%s2333_s5 + $0x20] sm:$0xff]  }
 0x12b   : > { %v608_v15 = vadd.f32 %v607_v14, %v2104_v3  ;;  %v609_v16 = vpop.f32.mrb[35].mxu0  ;;  %1002 = vmatmul.mubr.bf16.gmra.mrb[28].mxu1 %v760_v4  ;;  %v714_v18 = vmax.f32 %v604_v10, 0.0  ;;  %1801 = vmatprep.subr.bf16.mxu0 %v1886_v5 }
 0x12c   : > { %v610_v17 = vadd.f32 %v609_v16, %v2106_v12  ;;  %v715_v20 = vmax.f32 %v606_v13, 0.0  ;;  %1802 = vmatpush3.bf16.msra.mxu0 %v1886_v5 }
 0x12d   : > { %v716_v19 = vmax.f32 %v608_v15, 0.0 }
 0x12e   : > { %v717_v21 = vmax.f32 %v610_v17, 0.0  ;;  %v1887_v17 = vld [vmem:[%s2333_s5 + $0x28] sm:$0xff]  }
 0x12f   : > { %v762_v22 = vpack.c.bf16 %v716_v19, %v714_v18  ;;  %1803 = vmatprep.subr.bf16.mxu0 %v1887_v17 }
 0x130   : > { %v763_v23 = vpack.c.bf16 %v717_v21, %v715_v20  ;;  %v613_v24 = vpop.f32.mrb[36].mxu0  ;;  %1804 = vmatpush3.bf16.msra.mxu0 %v1887_v17 }
 0x131   : > { %v614_v25 = vadd.f32 %v613_v24, %v2104_v3  ;;  %v615_v26 = vpop.f32.mrb[37].mxu0 }
 0x132   : > { %v616_v27 = vadd.f32 %v615_v26, %v2106_v12  ;;  %v617_v28 = vpop.f32.mrb[38].mxu0  ;;  %1009 = vmatprep.mubr.bf16.mxu1 %v763_v23 }
 0x133   : > { %v618_v29 = vadd.f32 %v617_v28, %v2104_v3  ;;  %v619_v30 = vpop.f32.mrb[39].mxu0  ;;  %1010 = vmatmul.mubr.bf16.gmra.mrb[32].mxu1 %v762_v22  ;;  %v718_v32 = vmax.f32 %v614_v25, 0.0  ;;  %v1888_v25 = vld [vmem:[%s2333_s5 + $0x30] sm:$0xff]  }
 0x134   : > { %v620_v31 = vadd.f32 %v619_v30, %v2106_v12  ;;  %v719_v34 = vmax.f32 %v616_v27, 0.0  ;;  %1805 = vmatprep.subr.bf16.mxu0 %v1888_v25 }
 0x135   : > { %v720_v33 = vmax.f32 %v618_v29, 0.0  ;;  %1806 = vmatpush3.bf16.msra.mxu0 %v1888_v25 }
 0x136   : > { %v721_v35 = vmax.f32 %v620_v31, 0.0 }
 0x137   : > { %v764_v36 = vpack.c.bf16 %v720_v33, %v718_v32  ;;  %v1889_v33 = vld [vmem:[%s2333_s5 + $0x38] sm:$0xff]  }
 0x138   : > { %v765_v37 = vpack.c.bf16 %v721_v35, %v719_v34  ;;  %v623_v38 = vpop.f32.mrb[40].mxu0  ;;  %1807 = vmatprep.subr.bf16.mxu0 %v1889_v33 }
 0x139   : > { %v624_v39 = vadd.f32 %v623_v38, %v2104_v3  ;;  %v625_v40 = vpop.f32.mrb[41].mxu0  ;;  %1808 = vmatpush3.bf16.msra.mxu0 %v1889_v33 }
 0x13a   : > { %v626_v41 = vadd.f32 %v625_v40, %v2106_v12  ;;  %v627_v42 = vpop.f32.mrb[42].mxu0  ;;  %1017 = vmatprep.mubr.bf16.mxu1 %v765_v37 }
 0x13b   : > { %v628_v43 = vadd.f32 %v627_v42, %v2104_v3  ;;  %v629_v44 = vpop.f32.mrb[43].mxu0  ;;  %1018 = vmatmul.mubr.bf16.gmra.mrb[36].mxu1 %v764_v36  ;;  %v722_v46 = vmax.f32 %v624_v39, 0.0 }
 0x13c   : > { %v630_v45 = vadd.f32 %v629_v44, %v2106_v12  ;;  %v723_v48 = vmax.f32 %v626_v41, 0.0 }
 0x13d   : > { %v724_v47 = vmax.f32 %v628_v43, 0.0 }
 0x13e   : > { %v725_v49 = vmax.f32 %v630_v45, 0.0 }
 0x13f   : > { %v766_v50 = vpack.c.bf16 %v724_v47, %v722_v46 }
 0x140   : > { %v767_v51 = vpack.c.bf16 %v725_v49, %v723_v48  ;;  %v633_v52 = vpop.f32.mrb[44].mxu0 }
 0x141   : > { %v634_v53 = vadd.f32 %v633_v52, %v2104_v3  ;;  %v635_v54 = vpop.f32.mrb[45].mxu0 }
 0x142   : > { %v636_v55 = vadd.f32 %v635_v54, %v2106_v12  ;;  %v637_v56 = vpop.f32.mrb[46].mxu0  ;;  %1025 = vmatprep.mubr.bf16.mxu1 %v767_v51 }
 0x143   : > { %v638_v57 = vadd.f32 %v637_v56, %v2104_v3  ;;  %v639_v58 = vpop.f32.mrb[47].mxu0  ;;  %1026 = vmatmul.mubr.bf16.gmra.mrb[40].mxu1 %v766_v50  ;;  %v726_v61 = vmax.f32 %v634_v53, 0.0 }
 0x144   : > { %v640_v59 = vadd.f32 %v639_v58, %v2106_v12  ;;  %v727_v63 = vmax.f32 %v636_v55, 0.0 }
 0x145   : > { %v728_v62 = vmax.f32 %v638_v57, 0.0 }
 0x146   : > { %v729_v0 = vmax.f32 %v640_v59, 0.0 }
 0x147   : > { %v768_v1 = vpack.c.bf16 %v728_v62, %v726_v61 }
 0x148   : > { %v769_v2 = vpack.c.bf16 %v729_v0, %v727_v63  ;;  %v643_v4 = vpop.f32.mrb[48].mxu0 }
 0x149   : > { %v644_v6 = vadd.f32 %v643_v4, %v2104_v3  ;;  %v645_v10 = vpop.f32.mrb[49].mxu0 }
 0x14a   : > { %v646_v11 = vadd.f32 %v645_v10, %v2106_v12  ;;  %v647_v13 = vpop.f32.mrb[50].mxu0  ;;  %1033 = vmatprep.mubr.bf16.mxu1 %v769_v2 }
 0x14b   : > { %v648_v14 = vadd.f32 %v647_v13, %v2104_v3  ;;  %v649_v15 = vpop.f32.mrb[51].mxu0  ;;  %1034 = vmatmul.mubr.bf16.gmra.mrb[44].mxu1 %v768_v1  ;;  %v730_v18 = vmax.f32 %v644_v6, 0.0  ;;  %v2199_v6 = vld [vmem:[%s2332_s4] ss:$0 sm:$0xff] }
 0x14c   : > { %v650_v16 = vadd.f32 %v649_v15, %v2106_v12  ;;  %v731_v20 = vmax.f32 %v646_v11, 0.0 }
 0x14d   : > { %v732_v19 = vmax.f32 %v648_v14, 0.0 }
 0x14e   : > { %v733_v21 = vmax.f32 %v650_v16, 0.0 }
 0x14f   : > { %v770_v22 = vpack.c.bf16 %v732_v19, %v730_v18 }
 0x150   : > { %v771_v23 = vpack.c.bf16 %v733_v21, %v731_v20  ;;  %v653_v24 = vpop.f32.mrb[52].mxu0 }
 0x151   : > { %v654_v26 = vadd.f32 %v653_v24, %v2104_v3  ;;  %v655_v27 = vpop.f32.mrb[53].mxu0 }
 0x152   : > { %v656_v28 = vadd.f32 %v655_v27, %v2106_v12  ;;  %v657_v29 = vpop.f32.mrb[54].mxu0  ;;  %1041 = vmatprep.mubr.bf16.mxu1 %v771_v23 }
 0x153   : > { %v658_v30 = vadd.f32 %v657_v29, %v2104_v3  ;;  %v659_v31 = vpop.f32.mrb[55].mxu0  ;;  %1042 = vmatmul.mubr.bf16.gmra.mrb[48].mxu1 %v770_v22  ;;  %v734_v34 = vmax.f32 %v654_v26, 0.0 }
 0x154   : > { %v660_v32 = vadd.f32 %v659_v31, %v2106_v12  ;;  %v735_v36 = vmax.f32 %v656_v28, 0.0 }
 0x155   : > { %v736_v35 = vmax.f32 %v658_v30, 0.0 }
 0x156   : > { %v737_v37 = vmax.f32 %v660_v32, 0.0 }
 0x157   : > { %v772_v38 = vpack.c.bf16 %v736_v35, %v734_v34 }
 0x158   : > { %v773_v39 = vpack.c.bf16 %v737_v37, %v735_v36  ;;  %v663_v40 = vpop.f32.mrb[56].mxu0 }
 0x159   : > { %v664_v41 = vadd.f32 %v663_v40, %v2104_v3  ;;  %v665_v42 = vpop.f32.mrb[57].mxu0 }
 0x15a   : > { %v666_v43 = vadd.f32 %v665_v42, %v2106_v12  ;;  %v667_v44 = vpop.f32.mrb[58].mxu0  ;;  %1049 = vmatprep.mubr.bf16.mxu1 %v773_v39 }
 0x15b   : > { %v668_v45 = vadd.f32 %v667_v44, %v2104_v3  ;;  %v669_v46 = vpop.f32.mrb[59].mxu0  ;;  %1050 = vmatmul.mubr.bf16.gmra.mrb[52].mxu1 %v772_v38  ;;  %v738_v48 = vmax.f32 %v664_v41, 0.0 }
 0x15c   : > { %v670_v47 = vadd.f32 %v669_v46, %v2106_v12  ;;  %v739_v50 = vmax.f32 %v666_v43, 0.0 }
 0x15d   : > { %v740_v49 = vmax.f32 %v668_v45, 0.0 }
 0x15e   : > { %v741_v51 = vmax.f32 %v670_v47, 0.0 }
 0x15f   : > { %v774_v52 = vpack.c.bf16 %v740_v49, %v738_v48 }
 0x160   : > { %v775_v53 = vpack.c.bf16 %v741_v51, %v739_v50  ;;  %v673_v54 = vpop.f32.mrb[60].mxu0 }
 0x161   : > { %v674_v55 = vadd.f32 %v673_v54, %v2104_v3  ;;  %v675_v56 = vpop.f32.mrb[61].mxu0 }
 0x162   : > { %v676_v57 = vadd.f32 %v675_v56, %v2106_v12  ;;  %v677_v58 = vpop.f32.mrb[62].mxu0  ;;  %1057 = vmatprep.mubr.bf16.mxu1 %v775_v53 }
 0x163   : > { %v678_v59 = vadd.f32 %v677_v58, %v2104_v3  ;;  %v679_v60 = vpop.f32.mrb[63].mxu0  ;;  %1058 = vmatmul.mubr.bf16.gmra.mrb[56].mxu1 %v774_v52  ;;  %v742_v62 = vmax.f32 %v674_v55, 0.0 }
 0x164   : > { %v680_v61 = vadd.f32 %v679_v60, %v2106_v12  ;;  %v743_v0 = vmax.f32 %v676_v57, 0.0 }
 0x165   : > { %v744_v63 = vmax.f32 %v678_v59, 0.0 }
 0x166   : > { %v745_v1 = vmax.f32 %v680_v61, 0.0 }
 0x167   : > { %v776_v2 = vpack.c.bf16 %v744_v63, %v742_v62 }
 0x168   : > { %v777_v4 = vpack.c.bf16 %v745_v1, %v743_v0 }
 0x16a   : > { %1065 = vmatprep.mubr.bf16.mxu1 %v777_v4 }
 0x16b   : > { %1066 = vmatmul.mubr.bf16.gmra.mrb[60].mxu1 %v776_v2 }
 0x1c6   : > { %v1655_v5 = vpop.f32.mrb[0].mxu1 }
 0x1c7   : > { %v1656_v10 = vpop.f32.mrb[1].mxu1 }
 0x1c8   : > { %v1657_v3 = vadd.f32 %v1656_v10, %v1655_v5  ;;  %v1658_v11 = vpop.f32.mrb[2].mxu1 }
 0x1c9   : > { %v1659_v13 = vpop.f32.mrb[3].mxu1 }
 0x1ca   : > { %v948_v12 = vadd.f32 %v1657_v3, %v2199_v6  ;;  %v1660_v14 = vadd.f32 %v1659_v13, %v1658_v11 }
 0x1cc   : > { %v951_v15 = vadd.f32 %v1660_v14, %v2199_v6  ;;  %v1074_v16 = vmax.f32 %v948_v12, 0.0 }
 0x1ce   : > { %v1075_v17 = vmax.f32 %v951_v15, 0.0  ;;  %v1661_v18 = vpop.f32.mrb[4].mxu1 }
 0x1cf   : > { %v1662_v19 = vpop.f32.mrb[5].mxu1 }
 0x1d0   : > { %v1663_v20 = vadd.f32 %v1662_v19, %v1661_v18  ;;  %v1664_v21 = vpop.f32.mrb[6].mxu1  ;;  %v1106_v22 = vpack.c.bf16 %v1075_v17, %v1074_v16 }
 0x1d1   : > { %v1665_v23 = vpop.f32.mrb[7].mxu1 }
 0x1d2   : > { %v956_v24 = vadd.f32 %v1663_v20, %v2199_v6  ;;  %v1666_v25 = vadd.f32 %v1665_v23, %v1664_v21  ;;  %1809 = vmatprep.mubr.bf16.mxu0 %v1106_v22 }
 0x1d4   : > { %v959_v26 = vadd.f32 %v1666_v25, %v2199_v6  ;;  %v1076_v27 = vmax.f32 %v956_v24, 0.0 }
 0x1d6   : > { %v1077_v28 = vmax.f32 %v959_v26, 0.0  ;;  %v1667_v29 = vpop.f32.mrb[8].mxu1 }
 0x1d7   : > { %v1668_v30 = vpop.f32.mrb[9].mxu1 }
 0x1d8   : > { %v1107_v31 = vpack.c.bf16 %v1077_v28, %v1076_v27  ;;  %v1669_v32 = vadd.f32 %v1668_v30, %v1667_v29  ;;  %v1670_v33 = vpop.f32.mrb[10].mxu1 }
 0x1d9   : > { %v1671_v34 = vpop.f32.mrb[11].mxu1 }
 0x1da   : > { %v964_v35 = vadd.f32 %v1669_v32, %v2199_v6  ;;  %v1672_v36 = vadd.f32 %v1671_v34, %v1670_v33  ;;  %1810 = vmatmul.mubr.bf16.vlgmr.msra.gmra.mrb[64].mxu0 %v1107_v31 }
 0x1dc   : > { %v967_v37 = vadd.f32 %v1672_v36, %v2199_v6  ;;  %v1078_v38 = vmax.f32 %v964_v35, 0.0 }
 0x1de   : > { %v1079_v39 = vmax.f32 %v967_v37, 0.0  ;;  %v1673_v40 = vpop.f32.mrb[12].mxu1 }
 0x1df   : > { %v1674_v41 = vpop.f32.mrb[13].mxu1 }
 0x1e0   : > { %v1675_v42 = vadd.f32 %v1674_v41, %v1673_v40  ;;  %v1676_v43 = vpop.f32.mrb[14].mxu1  ;;  %v1108_v44 = vpack.c.bf16 %v1079_v39, %v1078_v38 }
 0x1e1   : > { %v1677_v45 = vpop.f32.mrb[15].mxu1 }
 0x1e2   : > { %v972_v46 = vadd.f32 %v1675_v42, %v2199_v6  ;;  %v1678_v47 = vadd.f32 %v1677_v45, %v1676_v43  ;;  %1813 = vmatprep.mubr.bf16.mxu0 %v1108_v44 }
 0x1e4   : > { %v975_v48 = vadd.f32 %v1678_v47, %v2199_v6  ;;  %v1080_v49 = vmax.f32 %v972_v46, 0.0 }
 0x1e6   : > { %v1081_v50 = vmax.f32 %v975_v48, 0.0  ;;  %v1679_v51 = vpop.f32.mrb[16].mxu1 }
 0x1e7   : > { %v1680_v52 = vpop.f32.mrb[17].mxu1 }
 0x1e8   : > { %v1681_v53 = vadd.f32 %v1680_v52, %v1679_v51  ;;  %v1682_v54 = vpop.f32.mrb[18].mxu1  ;;  %v1109_v55 = vpack.c.bf16 %v1081_v50, %v1080_v49 }
 0x1e9   : > { %v1683_v56 = vpop.f32.mrb[19].mxu1 }
 0x1ea   : > { %v980_v57 = vadd.f32 %v1681_v53, %v2199_v6  ;;  %v1684_v58 = vadd.f32 %v1683_v56, %v1682_v54  ;;  %1814 = vmatmul.mubr.bf16.gmra.mrb[68].mxu0 %v1109_v55 }
 0x1ec   : > { %v983_v59 = vadd.f32 %v1684_v58, %v2199_v6  ;;  %v1082_v60 = vmax.f32 %v980_v57, 0.0 }
 0x1ee   : > { %v1083_v61 = vmax.f32 %v983_v59, 0.0  ;;  %v1685_v62 = vpop.f32.mrb[20].mxu1 }
 0x1ef   : > { %v1686_v63 = vpop.f32.mrb[21].mxu1 }
 0x1f0   : > { %v1687_v0 = vadd.f32 %v1686_v63, %v1685_v62  ;;  %v1688_v1 = vpop.f32.mrb[22].mxu1  ;;  %v1110_v2 = vpack.c.bf16 %v1083_v61, %v1082_v60 }
 0x1f1   : > { %v1689_v4 = vpop.f32.mrb[23].mxu1 }
 0x1f2   : > { %v988_v5 = vadd.f32 %v1687_v0, %v2199_v6  ;;  %v1690_v10 = vadd.f32 %v1689_v4, %v1688_v1  ;;  %1817 = vmatprep.mubr.bf16.mxu0 %v1110_v2 }
 0x1f4   : > { %v991_v3 = vadd.f32 %v1690_v10, %v2199_v6  ;;  %v1084_v11 = vmax.f32 %v988_v5, 0.0 }
 0x1f6   : > { %v1085_v13 = vmax.f32 %v991_v3, 0.0  ;;  %v1691_v12 = vpop.f32.mrb[24].mxu1 }
 0x1f7   : > { %v1692_v14 = vpop.f32.mrb[25].mxu1 }
 0x1f8   : > { %v1693_v15 = vadd.f32 %v1692_v14, %v1691_v12  ;;  %v1694_v16 = vpop.f32.mrb[26].mxu1  ;;  %v1111_v17 = vpack.c.bf16 %v1085_v13, %v1084_v11 }
 0x1f9   : > { %v1695_v18 = vpop.f32.mrb[27].mxu1 }
 0x1fa   : > { %v996_v19 = vadd.f32 %v1693_v15, %v2199_v6  ;;  %v1696_v20 = vadd.f32 %v1695_v18, %v1694_v16  ;;  %1818 = vmatmul.mubr.bf16.gmra.mrb[72].mxu0 %v1111_v17 }
 0x1fc   : > { %v999_v21 = vadd.f32 %v1696_v20, %v2199_v6  ;;  %v1086_v22 = vmax.f32 %v996_v19, 0.0 }
 0x1fe   : > { %v1087_v23 = vmax.f32 %v999_v21, 0.0  ;;  %v1697_v24 = vpop.f32.mrb[28].mxu1 }
 0x1ff   : > { %v1698_v25 = vpop.f32.mrb[29].mxu1 }
 0x200   : > { %v1699_v26 = vadd.f32 %v1698_v25, %v1697_v24  ;;  %v1700_v27 = vpop.f32.mrb[30].mxu1  ;;  %v1112_v28 = vpack.c.bf16 %v1087_v23, %v1086_v22 }
 0x201   : > { %v1701_v29 = vpop.f32.mrb[31].mxu1 }
 0x202   : > { %v1004_v30 = vadd.f32 %v1699_v26, %v2199_v6  ;;  %v1702_v31 = vadd.f32 %v1701_v29, %v1700_v27  ;;  %1821 = vmatprep.mubr.bf16.mxu0 %v1112_v28 }
 0x204   : > { %v1007_v32 = vadd.f32 %v1702_v31, %v2199_v6  ;;  %v1088_v33 = vmax.f32 %v1004_v30, 0.0 }
 0x206   : > { %v1089_v34 = vmax.f32 %v1007_v32, 0.0  ;;  %v1703_v35 = vpop.f32.mrb[32].mxu1 }
 0x207   : > { %v1704_v36 = vpop.f32.mrb[33].mxu1 }
 0x208   : > { %v1705_v37 = vadd.f32 %v1704_v36, %v1703_v35  ;;  %v1706_v38 = vpop.f32.mrb[34].mxu1  ;;  %v1113_v39 = vpack.c.bf16 %v1089_v34, %v1088_v33 }
 0x209   : > { %v1707_v40 = vpop.f32.mrb[35].mxu1 }
 0x20a   : > { %v1012_v41 = vadd.f32 %v1705_v37, %v2199_v6  ;;  %v1708_v42 = vadd.f32 %v1707_v40, %v1706_v38  ;;  %1822 = vmatmul.mubr.bf16.gmra.mrb[76].mxu0 %v1113_v39 }
 0x20c   : > { %v1015_v43 = vadd.f32 %v1708_v42, %v2199_v6  ;;  %v1090_v44 = vmax.f32 %v1012_v41, 0.0 }
 0x20e   : > { %v1091_v45 = vmax.f32 %v1015_v43, 0.0  ;;  %v1709_v46 = vpop.f32.mrb[36].mxu1 }
 0x20f   : > { %v1710_v47 = vpop.f32.mrb[37].mxu1 }
 0x210   : > { %v1711_v48 = vadd.f32 %v1710_v47, %v1709_v46  ;;  %v1712_v49 = vpop.f32.mrb[38].mxu1  ;;  %v1114_v50 = vpack.c.bf16 %v1091_v45, %v1090_v44 }
 0x211   : > { %v1713_v51 = vpop.f32.mrb[39].mxu1 }
 0x212   : > { %v1020_v52 = vadd.f32 %v1711_v48, %v2199_v6  ;;  %v1714_v53 = vadd.f32 %v1713_v51, %v1712_v49  ;;  %1825 = vmatprep.mubr.bf16.mxu0 %v1114_v50 }
 0x214   : > { %v1023_v54 = vadd.f32 %v1714_v53, %v2199_v6  ;;  %v1092_v55 = vmax.f32 %v1020_v52, 0.0 }
 0x216   : > { %v1093_v56 = vmax.f32 %v1023_v54, 0.0  ;;  %v1715_v57 = vpop.f32.mrb[40].mxu1 }
 0x217   : > { %v1716_v58 = vpop.f32.mrb[41].mxu1 }
 0x218   : > { %v1115_v59 = vpack.c.bf16 %v1093_v56, %v1092_v55  ;;  %v1717_v60 = vadd.f32 %v1716_v58, %v1715_v57  ;;  %v1718_v61 = vpop.f32.mrb[42].mxu1 }
 0x219   : > { %v1719_v62 = vpop.f32.mrb[43].mxu1 }
 0x21a   : > { %1826 = vmatmul.mubr.bf16.gmra.mrb[80].mxu0 %v1115_v59  ;;  %v1028_v63 = vadd.f32 %v1717_v60, %v2199_v6  ;;  %v1720_v0 = vadd.f32 %v1719_v62, %v1718_v61 }
 0x21c   : > { %v1031_v1 = vadd.f32 %v1720_v0, %v2199_v6  ;;  %v1094_v2 = vmax.f32 %v1028_v63, 0.0  ;;  %v2236_v0 = vld [vmem:[%s2334_s6] ss:$0 sm:$0xff] }
 0x21e   : > { %v1095_v4 = vmax.f32 %v1031_v1, 0.0  ;;  %v1721_v5 = vpop.f32.mrb[44].mxu1 }
 0x21f   : > { %v1722_v10 = vpop.f32.mrb[45].mxu1 }
 0x220   : > { %v1723_v3 = vadd.f32 %v1722_v10, %v1721_v5  ;;  %v1724_v11 = vpop.f32.mrb[46].mxu1  ;;  %v1116_v13 = vpack.c.bf16 %v1095_v4, %v1094_v2 }
 0x221   : > { %v1725_v12 = vpop.f32.mrb[47].mxu1 }
 0x222   : > { %v1036_v14 = vadd.f32 %v1723_v3, %v2199_v6  ;;  %v1726_v15 = vadd.f32 %v1725_v12, %v1724_v11  ;;  %1829 = vmatprep.mubr.bf16.mxu0 %v1116_v13 }
 0x224   : > { %v1039_v16 = vadd.f32 %v1726_v15, %v2199_v6  ;;  %v1096_v17 = vmax.f32 %v1036_v14, 0.0 }
 0x226   : > { %v1097_v18 = vmax.f32 %v1039_v16, 0.0  ;;  %v1727_v19 = vpop.f32.mrb[48].mxu1 }
 0x227   : > { %v1728_v20 = vpop.f32.mrb[49].mxu1 }
 0x228   : > { %v1117_v21 = vpack.c.bf16 %v1097_v18, %v1096_v17  ;;  %v1729_v22 = vadd.f32 %v1728_v20, %v1727_v19  ;;  %v1730_v23 = vpop.f32.mrb[50].mxu1  ;;  %v1403_v19 = vld [vmem:[#allocation2] sm:$0x1] }
 0x229   : > { %v1731_v24 = vpop.f32.mrb[51].mxu1  ;;  %1406 = vperm.xlu0 %1859, %v1403_v19  }
 0x22a   : > { %1830 = vmatmul.mubr.bf16.gmra.mrb[84].mxu0 %v1117_v21  ;;  %v1044_v25 = vadd.f32 %v1729_v22, %v2199_v6  ;;  %v1732_v26 = vadd.f32 %v1731_v24, %v1730_v23 }
 0x22c   : > { %v1047_v27 = vadd.f32 %v1732_v26, %v2199_v6  ;;  %v1098_v28 = vmax.f32 %v1044_v25, 0.0 }
 0x22e   : > { %v1099_v29 = vmax.f32 %v1047_v27, 0.0  ;;  %v1733_v30 = vpop.f32.mrb[52].mxu1 }
 0x22f   : > { %v1734_v31 = vpop.f32.mrb[53].mxu1 }
 0x230   : > { %v1735_v32 = vadd.f32 %v1734_v31, %v1733_v30  ;;  %v1736_v33 = vpop.f32.mrb[54].mxu1  ;;  %v1118_v34 = vpack.c.bf16 %v1099_v29, %v1098_v28 }
 0x231   : > { %v1737_v35 = vpop.f32.mrb[55].mxu1 }
 0x232   : > { %v1052_v36 = vadd.f32 %v1735_v32, %v2199_v6  ;;  %v1738_v37 = vadd.f32 %v1737_v35, %v1736_v33  ;;  %1833 = vmatprep.mubr.bf16.mxu0 %v1118_v34 }
 0x234   : > { %v1055_v38 = vadd.f32 %v1738_v37, %v2199_v6  ;;  %v1100_v39 = vmax.f32 %v1052_v36, 0.0 }
 0x236   : > { %v1101_v40 = vmax.f32 %v1055_v38, 0.0  ;;  %v1739_v41 = vpop.f32.mrb[56].mxu1 }
 0x237   : > { %v1740_v42 = vpop.f32.mrb[57].mxu1 }
 0x238   : > { %v1119_v43 = vpack.c.bf16 %v1101_v40, %v1100_v39  ;;  %v1741_v44 = vadd.f32 %v1740_v42, %v1739_v41  ;;  %v1742_v45 = vpop.f32.mrb[58].mxu1 }
 0x239   : > { %v1743_v46 = vpop.f32.mrb[59].mxu1 }
 0x23a   : > { %1834 = vmatmul.mubr.bf16.gmra.mrb[88].mxu0 %v1119_v43  ;;  %v1060_v47 = vadd.f32 %v1741_v44, %v2199_v6  ;;  %v1744_v48 = vadd.f32 %v1743_v46, %v1742_v45 }
 0x23c   : > { %v1063_v49 = vadd.f32 %v1744_v48, %v2199_v6  ;;  %v1102_v50 = vmax.f32 %v1060_v47, 0.0 }
 0x23e   : > { %v1103_v51 = vmax.f32 %v1063_v49, 0.0  ;;  %v1745_v52 = vpop.f32.mrb[60].mxu1 }
 0x23f   : > { %v1746_v53 = vpop.f32.mrb[61].mxu1 }
 0x240   : > { %v1747_v54 = vadd.f32 %v1746_v53, %v1745_v52  ;;  %v1748_v55 = vpop.f32.mrb[62].mxu1  ;;  %v1120_v56 = vpack.c.bf16 %v1103_v51, %v1102_v50 }
 0x241   : > { %v1749_v57 = vpop.f32.mrb[63].mxu1 }
 0x242   : > { %v1068_v58 = vadd.f32 %v1747_v54, %v2199_v6  ;;  %v1750_v59 = vadd.f32 %v1749_v57, %v1748_v55  ;;  %1837 = vmatprep.mubr.bf16.mxu0 %v1120_v56 }
 0x244   : > { %v1071_v60 = vadd.f32 %v1750_v59, %v2199_v6  ;;  %v1104_v61 = vmax.f32 %v1068_v58, 0.0  ;;  %v2244_v6 = vld [vmem:[%s2335_s7] sm:$0x1] }
 0x245   : > { %1791 = vmatprep.mubr.msk.bf16.mxu1 %vm1413_vm1, %v2244_v6 }
 0x246   : > { %v1105_v62 = vmax.f32 %v1071_v60, 0.0 }
 0x248   : > { %v1121_v63 = vpack.c.bf16 %v1105_v62, %v1104_v61 }
 0x24a   : > { %1838 = vmatmul.mubr.bf16.gmra.mrb[92].mxu0 %v1121_v63 }
 0x2ad   : > { %v1811_v1 = vpop.f32.mrb[64].mxu0 }
 0x2ae   : > { %v1236_v2 = vadd.f32 %v1811_v1, %v2236_v0  ;;  %v1227_v4 = vpop.f32.mrb[65].mxu0 }
 0x2af   : > { %v1228_v5 = vadd.f32 %v2236_v0, %v1227_v4  ;;  %v1812_v10 = vpop.f32.mrb[66].mxu0 }
 0x2b0   : > { %v1239_v3 = vadd.f32 %v1812_v10, %v2236_v0  ;;  %v1230_v11 = vpop.f32.mrb[67].mxu0  ;;  %v1356_v12 = vmax.f32 %v1236_v2, 0.0 }
 0x2b1   : > { %v1231_v13 = vadd.f32 %v2236_v0, %v1230_v11  ;;  %v1354_v15 = vmax.f32 %v1228_v5, 0.0 }
 0x2b2   : > { %v1357_v14 = vmax.f32 %v1239_v3, 0.0 }
 0x2b3   : > { %v1355_v16 = vmax.f32 %v1231_v13, 0.0 }
 0x2b4   : > { %v2249_v17 = vpack.c.bf16 %v1357_v14, %v1356_v12 }
 0x2b5   : > { %v1387_v18 = vpack.c.bf16 %v1355_v16, %v1354_v15 }
 0x2b7   : > { %v1418_v19 = vsel %vm1413_vm1, %v1387_v18, 0 }
 0x2bd   : > { %v1815_v20 = vpop.f32.mrb[68].mxu0 }
 0x2be   : > { %v1252_v21 = vadd.f32 %v1815_v20, %v2236_v0  ;;  %v1243_v22 = vpop.f32.mrb[69].mxu0 }
 0x2bf   : > { %v1244_v23 = vadd.f32 %v2236_v0, %v1243_v22  ;;  %v1816_v24 = vpop.f32.mrb[70].mxu0 }
 0x2c0   : > { %v1255_v25 = vadd.f32 %v1816_v24, %v2236_v0  ;;  %v1246_v26 = vpop.f32.mrb[71].mxu0  ;;  %v1360_v28 = vmax.f32 %v1252_v21, 0.0 }
 0x2c1   : > { %v1247_v27 = vadd.f32 %v2236_v0, %v1246_v26  ;;  %v1358_v30 = vmax.f32 %v1244_v23, 0.0 }
 0x2c2   : > { %v1361_v29 = vmax.f32 %v1255_v25, 0.0  ;;  %v1421_v25 = vsel %vm1413_vm1, %v2249_v17, 0 }
 0x2c3   : > { %v1359_v31 = vmax.f32 %v1247_v27, 0.0 }
 0x2c4   : > { %v2255_v32 = vpack.c.bf16 %v1361_v29, %v1360_v28 }
 0x2c5   : > { %v2257_v33 = vpack.c.bf16 %v1359_v31, %v1358_v30 }
 0x2cd   : > { %v1819_v34 = vpop.f32.mrb[72].mxu0 }
 0x2ce   : > { %v1268_v35 = vadd.f32 %v1819_v34, %v2236_v0  ;;  %v1259_v36 = vpop.f32.mrb[73].mxu0 }
 0x2cf   : > { %v1260_v37 = vadd.f32 %v2236_v0, %v1259_v36  ;;  %v1820_v38 = vpop.f32.mrb[74].mxu0  ;;  %v1424_v36 = vsel %vm1413_vm1, %v2257_v33, 0 }
 0x2d0   : > { %v1271_v39 = vadd.f32 %v1820_v38, %v2236_v0  ;;  %v1262_v40 = vpop.f32.mrb[75].mxu0  ;;  %v1364_v42 = vmax.f32 %v1268_v35, 0.0 }
 0x2d1   : > { %v1263_v41 = vadd.f32 %v2236_v0, %v1262_v40  ;;  %v1362_v44 = vmax.f32 %v1260_v37, 0.0 }
 0x2d2   : > { %v1365_v43 = vmax.f32 %v1271_v39, 0.0 }
 0x2d3   : > { %v1363_v45 = vmax.f32 %v1263_v41, 0.0  ;;  %v1427_v41 = vsel %vm1413_vm1, %v2255_v32, 0 }
 0x2d4   : > { %v2263_v46 = vpack.c.bf16 %v1365_v43, %v1364_v42 }
 0x2d5   : > { %v2265_v47 = vpack.c.bf16 %v1363_v45, %v1362_v44 }
 0x2dd   : > { %v1823_v48 = vpop.f32.mrb[76].mxu0 }
 0x2de   : > { %v1284_v49 = vadd.f32 %v1823_v48, %v2236_v0  ;;  %v1275_v50 = vpop.f32.mrb[77].mxu0 }
 0x2df   : > { %v1276_v51 = vadd.f32 %v2236_v0, %v1275_v50  ;;  %v1824_v52 = vpop.f32.mrb[78].mxu0 }
 0x2e0   : > { %v1287_v53 = vadd.f32 %v1824_v52, %v2236_v0  ;;  %v1278_v54 = vpop.f32.mrb[79].mxu0  ;;  %v1368_v56 = vmax.f32 %v1284_v49, 0.0  ;;  %v1430_v52 = vsel %vm1413_vm1, %v2265_v47, 0 }
 0x2e1   : > { %v1279_v55 = vadd.f32 %v2236_v0, %v1278_v54  ;;  %v1366_v58 = vmax.f32 %v1276_v51, 0.0 }
 0x2e2   : > { %v1369_v57 = vmax.f32 %v1287_v53, 0.0 }
 0x2e3   : > { %v1367_v59 = vmax.f32 %v1279_v55, 0.0 }
 0x2e4   : > { %v2271_v60 = vpack.c.bf16 %v1369_v57, %v1368_v56  ;;  %v1433_v57 = vsel %vm1413_vm1, %v2263_v46, 0 }
 0x2e5   : > { %v2273_v61 = vpack.c.bf16 %v1367_v59, %v1366_v58 }
 0x2e6   : > { %v1439_v46 = vsel %vm1413_vm1, %v2271_v60, 0 }
 0x2ed   : > { %v1827_v62 = vpop.f32.mrb[80].mxu0 }
 0x2ee   : > { %v1300_v63 = vadd.f32 %v1827_v62, %v2236_v0  ;;  %v1291_v1 = vpop.f32.mrb[81].mxu0 }
 0x2ef   : > { %v1292_v2 = vadd.f32 %v2236_v0, %v1291_v1  ;;  %v1828_v4 = vpop.f32.mrb[82].mxu0 }
 0x2f0   : > { %v1303_v5 = vadd.f32 %v1828_v4, %v2236_v0  ;;  %v1294_v10 = vpop.f32.mrb[83].mxu0  ;;  %v1372_v11 = vmax.f32 %v1300_v63, 0.0 }
 0x2f1   : > { %v1295_v3 = vadd.f32 %v2236_v0, %v1294_v10  ;;  %v1370_v12 = vmax.f32 %v1292_v2, 0.0  ;;  %v1436_v10 = vsel %vm1413_vm1, %v2273_v61, 0 }
 0x2f2   : > { %v1373_v13 = vmax.f32 %v1303_v5, 0.0 }
 0x2f3   : > { %v1371_v14 = vmax.f32 %v1295_v3, 0.0  ;;  %v1899_v3 = vmov 1966171168  }
 0x2f4   : > { %v1396_v15 = vpack.c.bf16 %v1373_v13, %v1372_v11  ;;  %v1510_v11 = vunpack.c.l.s4 %v1899_v3 }
 0x2f5   : > { %v1395_v16 = vpack.c.bf16 %v1371_v14, %v1370_v12 }
 0x2f6   : > { %v1511_v12 = vunpack.c.0.s8 %v1510_v11 }
 0x2f7   : > { %1841 = vmatprep.subr.msk.bf16.mxu1 %vm1413_vm1, %v1395_v16 }
 0x2f8   : > { %1776 = vmatpush3.bf16.xpose.msra.mxu1 %v1418_v19  ;;  %v1514_v19 = vsub.s32 %v1511_v12, %v2095_v8 }
 0x2f9   : > { %1842 = vmatprep.subr.msk.bf16.mxu1 %vm1413_vm1, %v1396_v15 }
 0x2fd   : > { %v1831_v20 = vpop.f32.mrb[84].mxu0 }
 0x2fe   : > { %v1316_v21 = vadd.f32 %v1831_v20, %v2236_v0  ;;  %v1307_v22 = vpop.f32.mrb[85].mxu0 }
 0x2ff   : > { %v1308_v23 = vadd.f32 %v2236_v0, %v1307_v22  ;;  %v1832_v24 = vpop.f32.mrb[86].mxu0 }
 0x300   : > { %v1319_v26 = vadd.f32 %v1832_v24, %v2236_v0  ;;  %v1310_v27 = vpop.f32.mrb[87].mxu0  ;;  %1778 = vmatpush3.bf16.xpose.msra.mxu1 %v1421_v25  ;;  %v1376_v18 = vmax.f32 %v1316_v21, 0.0 }
 0x301   : > { %v1311_v28 = vadd.f32 %v2236_v0, %v1310_v27  ;;  %v1374_v30 = vmax.f32 %v1308_v23, 0.0 }
 0x302   : > { %v1377_v29 = vmax.f32 %v1319_v26, 0.0 }
 0x303   : > { %v1375_v31 = vmax.f32 %v1311_v28, 0.0 }
 0x304   : > { %v1398_v34 = vpack.c.bf16 %v1377_v29, %v1376_v18 }
 0x305   : > { %v1397_v35 = vpack.c.bf16 %v1375_v31, %v1374_v30 }
 0x307   : > { %1843 = vmatprep.subr.msk.bf16.mxu1 %vm1413_vm1, %v1397_v35 }
 0x308   : > { %1780 = vmatpush3.bf16.xpose.msra.mxu1 %v1424_v36 }
 0x309   : > { %1844 = vmatprep.subr.msk.bf16.mxu1 %vm1413_vm1, %v1398_v34 }
 0x30d   : > { %v1835_v17 = vpop.f32.mrb[88].mxu0 }
 0x30e   : > { %v1332_v37 = vadd.f32 %v1835_v17, %v2236_v0  ;;  %v1323_v38 = vpop.f32.mrb[89].mxu0 }
 0x30f   : > { %v1324_v39 = vadd.f32 %v2236_v0, %v1323_v38  ;;  %v1836_v40 = vpop.f32.mrb[90].mxu0 }
 0x310   : > { %v1335_v42 = vadd.f32 %v1836_v40, %v2236_v0  ;;  %v1326_v43 = vpop.f32.mrb[91].mxu0  ;;  %1782 = vmatpush3.bf16.xpose.msra.mxu1 %v1427_v41  ;;  %v1380_v33 = vmax.f32 %v1332_v37, 0.0 }
 0x311   : > { %v1327_v44 = vadd.f32 %v2236_v0, %v1326_v43  ;;  %v1378_v48 = vmax.f32 %v1324_v39, 0.0 }
 0x312   : > { %v1381_v45 = vmax.f32 %v1335_v42, 0.0 }
 0x313   : > { %v1379_v49 = vmax.f32 %v1327_v44, 0.0 }
 0x314   : > { %v1400_v50 = vpack.c.bf16 %v1381_v45, %v1380_v33 }
 0x315   : > { %v1399_v51 = vpack.c.bf16 %v1379_v49, %v1378_v48 }
 0x317   : > { %1845 = vmatprep.subr.msk.bf16.mxu1 %vm1413_vm1, %v1399_v51 }
 0x318   : > { %1784 = vmatpush3.bf16.xpose.msra.mxu1 %v1430_v52 }
 0x319   : > { %1846 = vmatprep.subr.msk.bf16.mxu1 %vm1413_vm1, %v1400_v50 }
 0x31d   : > { %v1839_v32 = vpop.f32.mrb[92].mxu0 }
 0x31e   : > { %v1348_v53 = vadd.f32 %v1839_v32, %v2236_v0  ;;  %v1339_v54 = vpop.f32.mrb[93].mxu0 }
 0x31f   : > { %v1340_v55 = vadd.f32 %v2236_v0, %v1339_v54  ;;  %v1840_v56 = vpop.f32.mrb[94].mxu0 }
 0x320   : > { %v1351_v58 = vadd.f32 %v1840_v56, %v2236_v0  ;;  %v1342_v59 = vpop.f32.mrb[95].mxu0  ;;  %1786 = vmatpush3.bf16.xpose.msra.mxu1 %v1433_v57  ;;  %v1384_v47 = vmax.f32 %v1348_v53, 0.0 }
 0x321   : > { %v1343_v62 = vadd.f32 %v2236_v0, %v1342_v59  ;;  %v1382_v1 = vmax.f32 %v1340_v55, 0.0  ;;  %v1407_v0 = vpop.permute.xlu0 %1406 }
 0x322   : > { %v1385_v63 = vmax.f32 %v1351_v58, 0.0  ;;  %v1412_v13 = vrot.slane %v1407_v0, %v412_v9 }
 0x323   : > { %v1383_v2 = vmax.f32 %v1343_v62, 0.0 }
 0x324   : > { %v1402_v4 = vpack.c.bf16 %v1385_v63, %v1384_v47 }
 0x325   : > { %v1401_v5 = vpack.c.bf16 %v1383_v2, %v1382_v1 }
 0x327   : > { %1847 = vmatprep.subr.msk.bf16.mxu1 %vm1413_vm1, %v1401_v5 }
 0x328   : > { %1788 = vmatpush3.bf16.xpose.msra.mxu1 %v1436_v10 }
 0x329   : > { %1848 = vmatprep.subr.msk.bf16.mxu1 %vm1413_vm1, %v1402_v4 }
 0x330   : > { %1790 = vmatpush3.bf16.xpose.msra.mxu1 %v1439_v46 }
 0x337   : > { %1792 = vmatmul.mubr.msk.bf16.vlgmr.msra.gmra.mrb[64].mxu1 %vm1413_vm1, %v2244_v6 }
 0x40a   : > { %v1499_v14 = vpop.f32.mrb[64].mxu1 }
 0x40b   : > { %v1500_v61 = vadd.f32 %v1499_v14, %v1412_v13  ;;  %v1501_v15 = vpop.f32.mrb[65].mxu1 }
 0x40c   : > { %v1502_v16 = vadd.f32 %v1501_v15, %v1412_v13  ;;  %v1503_v60 = vpop.f32.mrb[66].mxu1 }
 0x40d   : > { %v1504_v20 = vpop.f32.mrb[67].mxu1 }
 0x40e   : > { %v1508_v21 = vcombine.low %v1500_v61, %v1502_v16 }
 0x410   : > { %v1515_v6 = vrot.slane %v1508_v21, %v1514_v19 }
 0x412   : > { %v1522_v9 = vrot.slane %v1515_v6, %v1514_v19 }
 0x414   : > { %1528 = vst.msk [vmem:[%s354_s24] sm:$0x3] %vm1526_vm2, %v1522_v9 }
 0x415 PF: > { %s21_s11 = sadd.s32 1, %s1896_s11  }
 0x416   : > { %p18_p5 = scmp.ge.s32.totalorder %s21_s11, 4  }
 0x418   :  { %20 = sbr.rel (!%p18_p5) target bundleno = 3 (0x3), region = 86 }

</bundles_post_ra>
